<compile_context>
chip_gen: v5e
topology: v5e:2x2
jax: 0.10.0
libtpu: 0.0.40
codegen_flags: <defaults>
</compile_context>

<pallas_src>
import jax
import jax.numpy as jnp
from jax.experimental import pallas as pl
from jax.experimental.pallas import tpu as pltpu


def _permute_scale_kernel(x_ref, s_ref, o_ref):
    # x_ref: (1, HW, C)  flattened-NHWC tile (C in lanes)
    # s_ref: (1, C)      per-channel scale
    # o_ref: (1, C, HW)  flattened-NCHW tile (HW in lanes -> lane-dense stores)
    x = x_ref[0]                      # (HW, C)
    s = s_ref[...]                    # (1, C), broadcasts over HW sublanes
    y = x * s                         # scale while C is the lane dim (cheap)
    o_ref[0] = y.T                    # single 2D transpose (HW, C) -> (C, HW)


def permute_mul(x_nhwc: jax.Array, layer_scale: jax.Array):
    """x_nhwc: (N, H, W, C) float32; layer_scale: (C,) (or (C,1,1)) float32.
    Returns (N, C, H, W) = layer_scale[:, None, None] * permute(x, [0,3,1,2])."""
    N, H, W, C = x_nhwc.shape
    HW = H * W
    x_flat = x_nhwc.reshape(N, HW, C)           # same memory layout, free
    scale_2d = layer_scale.reshape(1, C)

    out_flat = pl.pallas_call(
        _permute_scale_kernel,
        out_shape=jax.ShapeDtypeStruct((N, C, HW), x_nhwc.dtype),
        grid_spec=pltpu.PrefetchScalarGridSpec(
            num_scalar_prefetch=0,
            grid=(N,),
            in_specs=[
                pl.BlockSpec((1, HW, C), lambda n: (n, 0, 0)),
                pl.BlockSpec((1, C), lambda n: (0, 0)),
            ],
            out_specs=pl.BlockSpec((1, C, HW), lambda n: (n, 0, 0)),
        ),
        compiler_params=pltpu.CompilerParams(
            dimension_semantics=("parallel",),
        ),
    )(x_flat, scale_2d)

    # (N, C, H*W) -> (N, C, H, W): identical memory layout, zero-cost reshape.
    return out_flat.reshape(N, C, H, W)


if __name__ == "__main__":
    key = jax.random.PRNGKey(0)
    k_x, k_s = jax.random.split(key)

    # Shapes consistent with the module: x333 is [1, 14, 14, 768],
    # layer_scale28 is [768, 1, 1] (flattened here to [768]).
    N, H, W, C = 1, 14, 14, 768
    x = jax.random.normal(k_x, (N, H, W, C), dtype=jnp.float32)
    layer_scale = jax.random.uniform(k_s, (C,), dtype=jnp.float32)  # torch.rand equivalent

    out = permute_mul(x, layer_scale)
    out = jax.block_until_ready(out)

    # Reference check (plain JAX) for correctness.
    ref = layer_scale[None, :, None, None] * jnp.transpose(x, (0, 3, 1, 2))
    assert out.shape == (N, C, H, W)
    assert jnp.allclose(out, ref, atol=1e-6, rtol=1e-6)

    print("KERNEL_OK")
</pallas_src>

<mosaic_0001>
module attributes {stable_mosaic.version = 11 : i64} {
  func.func @_permute_scale_kernel(%arg0: i32, %arg1: memref<1x196x768xf32, #tpu.memory_space<vmem>>, %arg2: memref<1x768xf32, #tpu.memory_space<vmem>>, %arg3: memref<1x768x196xf32, #tpu.memory_space<vmem>>) attributes {dimension_semantics = [#tpu.dimension_semantics<parallel>], iteration_bounds = array<i64: 1>, scalar_prefetch = 0 : i64, scratch_operands = 0 : i64, tpu.core_type = #tpu.core_type<tc>, window_params = [{transform_indices = @transform_0, window_bounds = array<i64: 1, 196, 768>}, {pipeline_mode = #tpu.pipeline_mode<synchronous>, transform_indices = @transform_1, window_bounds = array<i64: 1, 768>}, {transform_indices = @transform_2, window_bounds = array<i64: 1, 768, 196>}]} {
    %c0 = arith.constant 0 : index
    %c0_0 = arith.constant 0 : index
    %c0_1 = arith.constant 0 : index
    %0 = vector.load %arg1[%c0, %c0_0, %c0_1] : memref<1x196x768xf32, #tpu.memory_space<vmem>>, vector<1x196x768xf32>
    %1 = vector.shape_cast %0 : vector<1x196x768xf32> to vector<196x768xf32>
    %c0_2 = arith.constant 0 : index
    %c0_3 = arith.constant 0 : index
    %2 = vector.load %arg2[%c0_2, %c0_3] : memref<1x768xf32, #tpu.memory_space<vmem>>, vector<1x768xf32>
    %3 = vector.broadcast %2 : vector<1x768xf32> to vector<196x768xf32>
    %4 = arith.mulf %1, %3 : vector<196x768xf32>
    %5 = tpu.transpose %4, [1, 0] : vector<196x768xf32> -> vector<768x196xf32>
    %c0_4 = arith.constant 0 : index
    %c0_5 = arith.constant 0 : index
    %c0_6 = arith.constant 0 : index
    %6 = vector.load %arg3[%c0_4, %c0_5, %c0_6] : memref<1x768x196xf32, #tpu.memory_space<vmem>>, vector<1x768x196xf32>
    %7 = vector.shape_cast %6 : vector<1x768x196xf32> to vector<768x196xf32>
    %8 = vector.shape_cast %5 : vector<768x196xf32> to vector<1x768x196xf32>
    tpu.vector_store %arg3[%c0_4, %c0_5, %c0_6], %8 {strides = array<i32>} : memref<1x768x196xf32, #tpu.memory_space<vmem>>, vector<1x768x196xf32>,
    return
  }
  func.func @transform_0(%arg0: i32) -> (i32, i32, i32) {
    %c0_i32 = arith.constant 0 : i32
    %c0_i32_0 = arith.constant 0 : i32
    %c0_i32_1 = arith.constant 0 : i32
    return %arg0, %c0_i32, %c0_i32_0 : i32, i32, i32
  }
  func.func @transform_1(%arg0: i32) -> (i32, i32) {
    %c0_i32 = arith.constant 0 : i32
    %c0_i32_0 = arith.constant 0 : i32
    %c0_i32_1 = arith.constant 0 : i32
    return %c0_i32, %c0_i32_0 : i32, i32
  }
  func.func @transform_2(%arg0: i32) -> (i32, i32, i32) {
    %c0_i32 = arith.constant 0 : i32
    %c0_i32_0 = arith.constant 0 : i32
    %c0_i32_1 = arith.constant 0 : i32
    return %arg0, %c0_i32, %c0_i32_0 : i32, i32, i32
  }
}

</mosaic_0001>

<bundles_post_ra>
// kernel: tpu_custom_call.1
= control target key start
LH: loop header
LB: loop body
LE: loop exit
PB: predicated region body
PF: predicated region fallthrough
CT: control target
= control target key end

     0   :  { %vm710_vm0 = vcmask 556032   ;;  %s2217_s0 = inlined_call_operand.vmem [shape: f32[1,196,768], index: 0, kind: input, shape index: {}]   ;;  %s2218_s1 = inlined_call_operand.vmem [shape: f32[1,768], index: 1, kind: input, shape index: {}]   ;;  %s2219_s2 = inlined_call_operand.vmem [shape: f32[1,768,196], index: 2, kind: output, shape index: {}]  }
   0x1   :  { %v12_v0 = vld [vmem:[%s2217_s0 + $0x8] sm:$0xff]  ;;  %v928_v1 = vld [vmem:[%s2218_s1] sm:$0x3f]  ;;  %v13_v5 = vld [vmem:[%s2217_s0 + $0x10] sm:$0xff] }
   0x2   :  { %v11_v2 = vld [vmem:[%s2217_s0] sm:$0xff]  ;;  %v934_v3 = vperm.slane %v928_v1, 1  ;;  %v937_v4 = vperm.slane %v928_v1, 0  ;;  %v943_v6 = vperm.slane %v928_v1, 2  ;;  %v18_v10 = vld [vmem:[%s2217_s0 + $0x38] sm:$0xff]  ;;  %v17_v11 = vld [vmem:[%s2217_s0 + $0x30] sm:$0xff] }
   0x3   :  { %v19_v12 = vld [vmem:[%s2217_s0 + $0x40] sm:$0xff]  ;;  %v24_v16 = vld [vmem:[%s2217_s0 + $0x68] sm:$0xff]  ;;  %v25_v18 = vld [vmem:[%s2217_s0 + $0x70] sm:$0xff] }
   0x4   :  { %v176_v7 = vmul.f32 %v934_v3, %v12_v0  ;;  %v175_v8 = vmul.f32 %v937_v4, %v11_v2  ;;  %v177_v9 = vmul.f32 %v943_v6, %v13_v5  ;;  %v182_v13 = vmul.f32 %v934_v3, %v18_v10  ;;  %v23_v17 = vld [vmem:[%s2217_s0 + $0x60] sm:$0xff]  ;;  %v30_v22 = vld [vmem:[%s2217_s0 + $0x98] sm:$0xff]  ;;  %v29_v23 = vld [vmem:[%s2217_s0 + $0x90] sm:$0xff] }
   0x5   :  { %v181_v14 = vmul.f32 %v937_v4, %v17_v11  ;;  %v183_v15 = vmul.f32 %v943_v6, %v19_v12  ;;  %v188_v19 = vmul.f32 %v934_v3, %v24_v16  ;;  %v187_v20 = vmul.f32 %v937_v4, %v23_v17  ;;  %v31_v24 = vld [vmem:[%s2217_s0 + $0xa0] sm:$0xff]  ;;  %v36_v28 = vld [vmem:[%s2217_s0 + $0xc8] sm:$0xff]  ;;  %v37_v30 = vld [vmem:[%s2217_s0 + $0xd0] sm:$0xff] }
   0x6   :  { %357 = vxpose.xlu1.b32.start [1/16] %v176_v7, 128  ;;  %325 = vxpose.xlu0.b32.start [1/16] %v175_v8, 128  ;;  %v189_v21 = vmul.f32 %v943_v6, %v25_v18  ;;  %v194_v25 = vmul.f32 %v934_v3, %v30_v22  ;;  %v193_v26 = vmul.f32 %v937_v4, %v29_v23  ;;  %v35_v29 = vld [vmem:[%s2217_s0 + $0xc0] sm:$0xff]  ;;  %v42_v34 = vld [vmem:[%s2217_s0 + $0xf8] sm:$0xff]  ;;  %v41_v35 = vld [vmem:[%s2217_s0 + $0xf0] sm:$0xff] }
   0x7   :  { %389 = vxpose.xlu2.b32.start [1/16] %v177_v9, 128  ;;  %v195_v27 = vmul.f32 %v943_v6, %v31_v24  ;;  %v200_v31 = vmul.f32 %v934_v3, %v36_v28  ;;  %v199_v32 = vmul.f32 %v937_v4, %v35_v29  ;;  %v201_v33 = vmul.f32 %v943_v6, %v37_v30  ;;  %v43_v36 = vld [vmem:[%s2217_s0 + $0x100] sm:$0xff]  ;;  %v48_v40 = vld [vmem:[%s2217_s0 + $0x128] sm:$0xff]  ;;  %v49_v42 = vld [vmem:[%s2217_s0 + $0x130] sm:$0xff] }
   0x8   :  { %v206_v37 = vmul.f32 %v934_v3, %v42_v34  ;;  %v205_v38 = vmul.f32 %v937_v4, %v41_v35  ;;  %v207_v39 = vmul.f32 %v943_v6, %v43_v36  ;;  %v47_v41 = vld [vmem:[%s2217_s0 + $0x120] sm:$0xff]  ;;  %v212_v43 = vmul.f32 %v934_v3, %v48_v40  ;;  %v54_v46 = vld [vmem:[%s2217_s0 + $0x158] sm:$0xff]  ;;  %v53_v47 = vld [vmem:[%s2217_s0 + $0x150] sm:$0xff] }
   0x9   :  { %v211_v44 = vmul.f32 %v937_v4, %v47_v41  ;;  %v213_v45 = vmul.f32 %v943_v6, %v49_v42  ;;  %v55_v48 = vld [vmem:[%s2217_s0 + $0x160] sm:$0xff]  ;;  %v218_v49 = vmul.f32 %v934_v3, %v54_v46  ;;  %v217_v50 = vmul.f32 %v937_v4, %v53_v47  ;;  %v60_v52 = vld [vmem:[%s2217_s0 + $0x188] sm:$0xff]  ;;  %v61_v54 = vld [vmem:[%s2217_s0 + $0x190] sm:$0xff] }
   0xa   :  { %v219_v51 = vmul.f32 %v943_v6, %v55_v48  ;;  %v59_v53 = vld [vmem:[%s2217_s0 + $0x180] sm:$0xff]  ;;  %v224_v55 = vmul.f32 %v934_v3, %v60_v52  ;;  %v225_v57 = vmul.f32 %v943_v6, %v61_v54  ;;  %v66_v58 = vld [vmem:[%s2217_s0 + $0x1b8] sm:$0xff]  ;;  %v65_v59 = vld [vmem:[%s2217_s0 + $0x1b0] sm:$0xff]  ;;  %v1129_v40 = vperm.slane %v928_v1, 4 }
   0xb   :  { %v223_v56 = vmul.f32 %v937_v4, %v59_v53  ;;  %v67_v60 = vld [vmem:[%s2217_s0 + $0x1c0] sm:$0xff]  ;;  %v230_v61 = vmul.f32 %v934_v3, %v66_v58  ;;  %v229_v62 = vmul.f32 %v937_v4, %v65_v59  ;;  %v72_v0 = vld [vmem:[%s2217_s0 + $0x1e8] sm:$0xff]  ;;  %v73_v5 = vld [vmem:[%s2217_s0 + $0x1f0] sm:$0xff]  ;;  %v1132_v41 = vperm.slane %v928_v1, 3 }
   0xc   :  { %v231_v63 = vmul.f32 %v943_v6, %v67_v60  ;;  %v71_v2 = vld [vmem:[%s2217_s0 + $0x1e0] sm:$0xff]  ;;  %v236_v7 = vmul.f32 %v934_v3, %v72_v0  ;;  %v237_v9 = vmul.f32 %v943_v6, %v73_v5  ;;  %v78_v10 = vld [vmem:[%s2217_s0 + $0x218] sm:$0xff]  ;;  %v77_v11 = vld [vmem:[%s2217_s0 + $0x210] sm:$0xff] }
   0xd   :  { %v235_v8 = vmul.f32 %v937_v4, %v71_v2  ;;  %v79_v12 = vld [vmem:[%s2217_s0 + $0x220] sm:$0xff]  ;;  %v84_v16 = vld [vmem:[%s2217_s0 + $0x248] sm:$0xff]  ;;  %v85_v18 = vld [vmem:[%s2217_s0 + $0x250] sm:$0xff] }
   0xe   :  { %358 = vxpose.xlu1.b32.cont [2/16] %v182_v13, 128  ;;  %326 = vxpose.xlu0.b32.cont [2/16] %v181_v14, 128  ;;  %v242_v13 = vmul.f32 %v934_v3, %v78_v10  ;;  %v241_v14 = vmul.f32 %v937_v4, %v77_v11  ;;  %v83_v17 = vld [vmem:[%s2217_s0 + $0x240] sm:$0xff]  ;;  %v90_v22 = vld [vmem:[%s2217_s0 + $0x278] sm:$0xff]  ;;  %v89_v23 = vld [vmem:[%s2217_s0 + $0x270] sm:$0xff] }
   0xf   :  { %390 = vxpose.xlu2.b32.cont [2/16] %v183_v15, 128  ;;  %v243_v15 = vmul.f32 %v943_v6, %v79_v12  ;;  %v91_v24 = vld [vmem:[%s2217_s0 + $0x280] sm:$0xff]  ;;  %v96_v28 = vld [vmem:[%s2217_s0 + $0x2a8] sm:$0xff]  ;;  %v97_v30 = vld [vmem:[%s2217_s0 + $0x2b0] sm:$0xff] }
  0x10   :  { %v95_v29 = vld [vmem:[%s2217_s0 + $0x2a0] sm:$0xff]  ;;  %v102_v34 = vld [vmem:[%s2217_s0 + $0x2d8] sm:$0xff]  ;;  %v101_v35 = vld [vmem:[%s2217_s0 + $0x2d0] sm:$0xff] }
  0x11   :  { %v103_v36 = vld [vmem:[%s2217_s0 + $0x2e0] sm:$0xff]  ;;  %v33_v60 = vld [vmem:[%s2217_s0 + $0xb0] sm:$0xff] }
  0x12   :  { %v15_v42 = vld [vmem:[%s2217_s0 + $0x20] sm:$0xff] }
  0x13   :  { %v179_v46 = vmul.f32 %v1129_v40, %v15_v42  ;;  %v27_v54 = vld [vmem:[%s2217_s0 + $0x80] sm:$0xff] }
  0x14   :  { %v39_v5 = vld [vmem:[%s2217_s0 + $0xe0] sm:$0xff] }
  0x15   :  { %v203_v10 = vmul.f32 %v1129_v40, %v39_v5  ;;  %v63_v42 = vld [vmem:[%s2217_s0 + $0x1a0] sm:$0xff] }
  0x16   :  { %359 = vxpose.xlu1.b32.cont [3/16] %v188_v19, 128  ;;  %327 = vxpose.xlu0.b32.cont [3/16] %v187_v20, 128  ;;  %v248_v19 = vmul.f32 %v934_v3, %v84_v16  ;;  %v247_v20 = vmul.f32 %v937_v4, %v83_v17  ;;  %v46_v16 = vld [vmem:[%s2217_s0 + $0x118] sm:$0xff] }
  0x17   :  { %391 = vxpose.xlu2.b32.cont [3/16] %v189_v21, 128  ;;  %v249_v21 = vmul.f32 %v943_v6, %v85_v18 }
  0x1e   :  { %360 = vxpose.xlu1.b32.cont [4/16] %v194_v25, 128  ;;  %328 = vxpose.xlu0.b32.cont [4/16] %v193_v26, 128  ;;  %v254_v25 = vmul.f32 %v934_v3, %v90_v22  ;;  %v253_v26 = vmul.f32 %v937_v4, %v89_v23  ;;  %v51_v22 = vld [vmem:[%s2217_s0 + $0x140] sm:$0xff]  ;;  %v50_v23 = vld [vmem:[%s2217_s0 + $0x138] sm:$0xff] }
  0x1f   :  { %392 = vxpose.xlu2.b32.cont [4/16] %v195_v27, 128  ;;  %v255_v27 = vmul.f32 %v943_v6, %v91_v24 }
  0x26   :  { %361 = vxpose.xlu1.b32.cont [5/16] %v200_v31, 128  ;;  %329 = vxpose.xlu0.b32.cont [5/16] %v199_v32, 128  ;;  %v260_v31 = vmul.f32 %v934_v3, %v96_v28  ;;  %v259_v32 = vmul.f32 %v937_v4, %v95_v29  ;;  %v215_v28 = vmul.f32 %v1129_v40, %v51_v22 }
  0x27   :  { %393 = vxpose.xlu2.b32.cont [5/16] %v201_v33, 128  ;;  %v261_v33 = vmul.f32 %v943_v6, %v97_v30  ;;  %v214_v29 = vmul.f32 %v1132_v41, %v50_v23 }
  0x2e   :  { %362 = vxpose.xlu1.b32.cont [6/16] %v206_v37, 128  ;;  %330 = vxpose.xlu0.b32.cont [6/16] %v205_v38, 128  ;;  %v266_v37 = vmul.f32 %v934_v3, %v102_v34  ;;  %v265_v38 = vmul.f32 %v937_v4, %v101_v35  ;;  %v58_v34 = vld [vmem:[%s2217_s0 + $0x178] sm:$0xff] }
  0x2f   :  { %394 = vxpose.xlu2.b32.cont [6/16] %v207_v39, 128  ;;  %v267_v39 = vmul.f32 %v943_v6, %v103_v36 }
  0x36   :  { %363 = vxpose.xlu1.b32.cont [7/16] %v212_v43, 128  ;;  %331 = vxpose.xlu0.b32.cont [7/16] %v211_v44, 128  ;;  %v14_v43 = vld [vmem:[%s2217_s0 + $0x18] sm:$0xff]  ;;  %v1141_v44 = vperm.slane %v928_v1, 5  ;;  %v20_v1 = vld [vmem:[%s2217_s0 + $0x48] sm:$0xff] }
  0x37   :  { %395 = vxpose.xlu2.b32.cont [7/16] %v213_v45, 128  ;;  %v16_v45 = vld [vmem:[%s2217_s0 + $0x28] sm:$0xff]  ;;  %v178_v47 = vmul.f32 %v1132_v41, %v14_v43  ;;  %v184_v52 = vmul.f32 %v1132_v41, %v20_v1  ;;  %v62_v43 = vld [vmem:[%s2217_s0 + $0x198] sm:$0xff] }
  0x38   :  { %v180_v48 = vmul.f32 %v1141_v44, %v16_v45  ;;  %v226_v1 = vmul.f32 %v1132_v41, %v62_v43 }
  0x3e   :  { %364 = vxpose.xlu1.b32.cont [8/16] %v218_v49, 128  ;;  %332 = vxpose.xlu0.b32.cont [8/16] %v217_v50, 128  ;;  %v21_v49 = vld [vmem:[%s2217_s0 + $0x50] sm:$0xff]  ;;  %v22_v50 = vld [vmem:[%s2217_s0 + $0x58] sm:$0xff] }
  0x3f   :  { %396 = vxpose.xlu2.b32.cont [8/16] %v219_v51, 128  ;;  %v185_v51 = vmul.f32 %v1129_v40, %v21_v49  ;;  %v186_v53 = vmul.f32 %v1141_v44, %v22_v50  ;;  %v227_v49 = vmul.f32 %v1129_v40, %v63_v42 }
  0x46   :  { %365 = vxpose.xlu1.b32.cont [9/16] %v224_v55, 128  ;;  %333 = vxpose.xlu0.b32.cont [9/16] %v223_v56, 128  ;;  %v26_v55 = vld [vmem:[%s2217_s0 + $0x78] sm:$0xff]  ;;  %v28_v56 = vld [vmem:[%s2217_s0 + $0x88] sm:$0xff] }
  0x47   :  { %397 = vxpose.xlu2.b32.cont [9/16] %v225_v57, 128  ;;  %v191_v57 = vmul.f32 %v1129_v40, %v27_v54  ;;  %v190_v58 = vmul.f32 %v1132_v41, %v26_v55  ;;  %v192_v59 = vmul.f32 %v1141_v44, %v28_v56  ;;  %v70_v54 = vld [vmem:[%s2217_s0 + $0x1d8] sm:$0xff] }
  0x4e   :  { %366 = vxpose.xlu1.b32.cont [10/16] %v230_v61, 128  ;;  %334 = vxpose.xlu0.b32.cont [10/16] %v229_v62, 128  ;;  %v32_v61 = vld [vmem:[%s2217_s0 + $0xa8] sm:$0xff]  ;;  %v34_v62 = vld [vmem:[%s2217_s0 + $0xb8] sm:$0xff] }
  0x4f   :  { %398 = vxpose.xlu2.b32.cont [10/16] %v231_v63, 128  ;;  %v197_v63 = vmul.f32 %v1129_v40, %v33_v60  ;;  %v196_v0 = vmul.f32 %v1132_v41, %v32_v61  ;;  %v198_v2 = vmul.f32 %v1141_v44, %v34_v62  ;;  %v75_v60 = vld [vmem:[%s2217_s0 + $0x200] sm:$0xff]  ;;  %v74_v61 = vld [vmem:[%s2217_s0 + $0x1f8] sm:$0xff] }
  0x50   :  { %v239_v5 = vmul.f32 %v1129_v40, %v75_v60 }
  0x56   :  { %367 = vxpose.xlu1.b32.cont [11/16] %v236_v7, 128  ;;  %335 = vxpose.xlu0.b32.cont [11/16] %v235_v8, 128  ;;  %v38_v7 = vld [vmem:[%s2217_s0 + $0xd8] sm:$0xff] }
  0x57   :  { %399 = vxpose.xlu2.b32.cont [11/16] %v237_v9, 128  ;;  %v40_v9 = vld [vmem:[%s2217_s0 + $0xe8] sm:$0xff]  ;;  %v202_v11 = vmul.f32 %v1132_v41, %v38_v7  ;;  %v238_v7 = vmul.f32 %v1132_v41, %v74_v61 }
  0x58   :  { %v204_v12 = vmul.f32 %v1141_v44, %v40_v9  ;;  %v81_v9 = vld [vmem:[%s2217_s0 + $0x230] sm:$0xff] }
  0x5e   :  { %368 = vxpose.xlu1.b32.cont [12/16] %v242_v13, 128  ;;  %336 = vxpose.xlu0.b32.cont [12/16] %v241_v14, 128  ;;  %v45_v13 = vld [vmem:[%s2217_s0 + $0x110] sm:$0xff]  ;;  %v44_v14 = vld [vmem:[%s2217_s0 + $0x108] sm:$0xff] }
  0x5f   :  { %400 = vxpose.xlu2.b32.cont [12/16] %v243_v15, 128 }
  0x66   :  { %369 = vxpose.xlu1.b32.cont [13/16] %v248_v19, 128  ;;  %337 = vxpose.xlu0.b32.cont [13/16] %v247_v20, 128  ;;  %v209_v19 = vmul.f32 %v1129_v40, %v45_v13  ;;  %v208_v20 = vmul.f32 %v1132_v41, %v44_v14 }
  0x67   :  { %401 = vxpose.xlu2.b32.cont [13/16] %v249_v21, 128  ;;  %v210_v21 = vmul.f32 %v1141_v44, %v46_v16 }
  0x6e   :  { %370 = vxpose.xlu1.b32.cont [14/16] %v254_v25, 128  ;;  %338 = vxpose.xlu0.b32.cont [14/16] %v253_v26, 128  ;;  %v52_v25 = vld [vmem:[%s2217_s0 + $0x148] sm:$0xff] }
  0x6f   :  { %402 = vxpose.xlu2.b32.cont [14/16] %v255_v27, 128  ;;  %v216_v30 = vmul.f32 %v1141_v44, %v52_v25 }
  0x76   :  { %371 = vxpose.xlu1.b32.cont [15/16] %v260_v31, 128  ;;  %339 = vxpose.xlu0.b32.cont [15/16] %v259_v32, 128  ;;  %v57_v31 = vld [vmem:[%s2217_s0 + $0x170] sm:$0xff]  ;;  %v56_v32 = vld [vmem:[%s2217_s0 + $0x168] sm:$0xff] }
  0x77   :  { %403 = vxpose.xlu2.b32.cont [15/16] %v261_v33, 128 }
  0x7e   :  { %372 = vxpose.xlu1.b32.end [16/16] %v266_v37, 128  ;;  %340 = vxpose.xlu0.b32.end [16/16] %v265_v38, 128  ;;  %v221_v37 = vmul.f32 %v1129_v40, %v57_v31  ;;  %v220_v38 = vmul.f32 %v1132_v41, %v56_v32 }
  0x7f   :  { %404 = vxpose.xlu2.b32.end [16/16] %v267_v39, 128  ;;  %v222_v39 = vmul.f32 %v1141_v44, %v58_v34 }
  0x86   :  { %453 = vxpose.xlu1.b32.start [1/16] %v179_v46, 128  ;;  %421 = vxpose.xlu0.b32.start [1/16] %v178_v47, 128  ;;  %v64_v46 = vld [vmem:[%s2217_s0 + $0x1a8] sm:$0xff] }
  0x87   :  { %485 = vxpose.xlu2.b32.start [1/16] %v180_v48, 128  ;;  %v228_v50 = vmul.f32 %v1141_v44, %v64_v46 }
  0x8e   :  { %454 = vxpose.xlu1.b32.cont [2/16] %v185_v51, 128  ;;  %422 = vxpose.xlu0.b32.cont [2/16] %v184_v52, 128  ;;  %v69_v51 = vld [vmem:[%s2217_s0 + $0x1d0] sm:$0xff]  ;;  %v68_v52 = vld [vmem:[%s2217_s0 + $0x1c8] sm:$0xff] }
  0x8f   :  { %486 = vxpose.xlu2.b32.cont [2/16] %v186_v53, 128 }
  0x96   :  { %455 = vxpose.xlu1.b32.cont [3/16] %v191_v57, 128  ;;  %423 = vxpose.xlu0.b32.cont [3/16] %v190_v58, 128  ;;  %v233_v57 = vmul.f32 %v1129_v40, %v69_v51  ;;  %v232_v58 = vmul.f32 %v1132_v41, %v68_v52 }
  0x97   :  { %487 = vxpose.xlu2.b32.cont [3/16] %v192_v59, 128  ;;  %v234_v59 = vmul.f32 %v1141_v44, %v70_v54 }
  0x9e   :  { %456 = vxpose.xlu1.b32.cont [4/16] %v197_v63, 128  ;;  %424 = vxpose.xlu0.b32.cont [4/16] %v196_v0, 128  ;;  %v76_v63 = vld [vmem:[%s2217_s0 + $0x208] sm:$0xff] }
  0x9f   :  { %488 = vxpose.xlu2.b32.cont [4/16] %v198_v2, 128 }
  0xa0   :  { %v405_v8 = vpop.trf.xlu2 }
  0xa1   :  { %774 = vst [vmem:[%s2219_s2 + $0x200] sm:$0xff] %v405_v8  ;;  %v240_v8 = vmul.f32 %v1141_v44, %v76_v63 }
  0xa6   :  { %457 = vxpose.xlu1.b32.cont [5/16] %v203_v10, 128  ;;  %425 = vxpose.xlu0.b32.cont [5/16] %v202_v11, 128  ;;  %v80_v10 = vld [vmem:[%s2217_s0 + $0x228] sm:$0xff] }
  0xa7   :  { %489 = vxpose.xlu2.b32.cont [5/16] %v204_v12, 128  ;;  %v82_v12 = vld [vmem:[%s2217_s0 + $0x238] sm:$0xff]  ;;  %v244_v16 = vmul.f32 %v1132_v41, %v80_v10 }
  0xa8   :  { %v406_v15 = vpop.trf.xlu2 }
  0xa9   :  { %776 = vst [vmem:[%s2219_s2 + $0x210] sm:$0xff] %v406_v15  ;;  %v245_v15 = vmul.f32 %v1129_v40, %v81_v9 }
  0xaa   :  { %v373_v17 = vpop.trf.xlu1  ;;  %v341_v18 = vpop.trf.xlu0 }
  0xab   :  { %742 = vst [vmem:[%s2219_s2 + $0x100] sm:$0xff] %v373_v17  ;;  %v246_v17 = vmul.f32 %v1141_v44, %v82_v12 }
  0xac   :  { %709 = vst [vmem:[%s2219_s2] sm:$0xff] %v341_v18  ;;  %v87_v18 = vld [vmem:[%s2217_s0 + $0x260] sm:$0xff] }
  0xae   :  { %458 = vxpose.xlu1.b32.cont [6/16] %v209_v19, 128  ;;  %426 = vxpose.xlu0.b32.cont [6/16] %v208_v20, 128  ;;  %v86_v19 = vld [vmem:[%s2217_s0 + $0x258] sm:$0xff] }
  0xaf   :  { %490 = vxpose.xlu2.b32.cont [6/16] %v210_v21, 128  ;;  %v88_v21 = vld [vmem:[%s2217_s0 + $0x268] sm:$0xff]  ;;  %v250_v25 = vmul.f32 %v1132_v41, %v86_v19 }
  0xb0   :  { %v407_v24 = vpop.trf.xlu2 }
  0xb1   :  { %778 = vst [vmem:[%s2219_s2 + $0x220] sm:$0xff] %v407_v24  ;;  %v251_v24 = vmul.f32 %v1129_v40, %v87_v18 }
  0xb2   :  { %v374_v26 = vpop.trf.xlu1  ;;  %v342_v27 = vpop.trf.xlu0 }
  0xb3   :  { %744 = vst [vmem:[%s2219_s2 + $0x110] sm:$0xff] %v374_v26  ;;  %v252_v26 = vmul.f32 %v1141_v44, %v88_v21 }
  0xb4   :  { %712 = vst [vmem:[%s2219_s2 + $0x10] sm:$0xff] %v342_v27  ;;  %v93_v27 = vld [vmem:[%s2217_s0 + $0x290] sm:$0xff] }
  0xb6   :  { %459 = vxpose.xlu1.b32.cont [7/16] %v215_v28, 128  ;;  %427 = vxpose.xlu0.b32.cont [7/16] %v214_v29, 128  ;;  %v92_v28 = vld [vmem:[%s2217_s0 + $0x288] sm:$0xff] }
  0xb7   :  { %491 = vxpose.xlu2.b32.cont [7/16] %v216_v30, 128  ;;  %v94_v30 = vld [vmem:[%s2217_s0 + $0x298] sm:$0xff]  ;;  %v256_v34 = vmul.f32 %v1132_v41, %v92_v28 }
  0xb8   :  { %v408_v33 = vpop.trf.xlu2 }
  0xb9   :  { %780 = vst [vmem:[%s2219_s2 + $0x230] sm:$0xff] %v408_v33  ;;  %v257_v33 = vmul.f32 %v1129_v40, %v93_v27 }
  0xba   :  { %v375_v35 = vpop.trf.xlu1  ;;  %v343_v36 = vpop.trf.xlu0 }
  0xbb   :  { %746 = vst [vmem:[%s2219_s2 + $0x120] sm:$0xff] %v375_v35  ;;  %v258_v35 = vmul.f32 %v1141_v44, %v94_v30 }
  0xbc   :  { %714 = vst [vmem:[%s2219_s2 + $0x20] sm:$0xff] %v343_v36  ;;  %v99_v36 = vld [vmem:[%s2217_s0 + $0x2c0] sm:$0xff] }
  0xbe   :  { %460 = vxpose.xlu1.b32.cont [8/16] %v221_v37, 128  ;;  %428 = vxpose.xlu0.b32.cont [8/16] %v220_v38, 128  ;;  %v98_v37 = vld [vmem:[%s2217_s0 + $0x2b8] sm:$0xff] }
  0xbf   :  { %492 = vxpose.xlu2.b32.cont [8/16] %v222_v39, 128  ;;  %v100_v39 = vld [vmem:[%s2217_s0 + $0x2c8] sm:$0xff]  ;;  %v262_v46 = vmul.f32 %v1132_v41, %v98_v37 }
  0xc0   :  { %v409_v45 = vpop.trf.xlu2 }
  0xc1   :  { %782 = vst [vmem:[%s2219_s2 + $0x240] sm:$0xff] %v409_v45  ;;  %v263_v45 = vmul.f32 %v1129_v40, %v99_v36 }
  0xc2   :  { %v376_v47 = vpop.trf.xlu1  ;;  %v344_v48 = vpop.trf.xlu0 }
  0xc3   :  { %748 = vst [vmem:[%s2219_s2 + $0x130] sm:$0xff] %v376_v47  ;;  %v264_v47 = vmul.f32 %v1141_v44, %v100_v39 }
  0xc4   :  { %716 = vst [vmem:[%s2219_s2 + $0x30] sm:$0xff] %v344_v48  ;;  %v105_v48 = vld [vmem:[%s2217_s0 + $0x2f0] sm:$0xff] }
  0xc6   :  { %461 = vxpose.xlu1.b32.cont [9/16] %v227_v49, 128  ;;  %429 = vxpose.xlu0.b32.cont [9/16] %v226_v1, 128  ;;  %v104_v49 = vld [vmem:[%s2217_s0 + $0x2e8] sm:$0xff] }
  0xc7   :  { %493 = vxpose.xlu2.b32.cont [9/16] %v228_v50, 128  ;;  %v106_v50 = vld [vmem:[%s2217_s0 + $0x2f8] sm:$0xff]  ;;  %v268_v54 = vmul.f32 %v1132_v41, %v104_v49 }
  0xc8   :  { %v410_v53 = vpop.trf.xlu2 }
  0xc9   :  { %784 = vst [vmem:[%s2219_s2 + $0x250] sm:$0xff] %v410_v53  ;;  %v269_v53 = vmul.f32 %v1129_v40, %v105_v48 }
  0xca   :  { %v377_v55 = vpop.trf.xlu1  ;;  %v345_v56 = vpop.trf.xlu0 }
  0xcb   :  { %750 = vst [vmem:[%s2219_s2 + $0x140] sm:$0xff] %v377_v55  ;;  %v270_v55 = vmul.f32 %v1141_v44, %v106_v50 }
  0xcc   :  { %718 = vst [vmem:[%s2219_s2 + $0x40] sm:$0xff] %v345_v56  ;;  %v108_v56 = vld [vmem:[%s2217_s0 + $0x308] sm:$0xff] }
  0xce   :  { %462 = vxpose.xlu1.b32.cont [10/16] %v233_v57, 128  ;;  %430 = vxpose.xlu0.b32.cont [10/16] %v232_v58, 128  ;;  %v107_v57 = vld [vmem:[%s2217_s0 + $0x300] sm:$0xff] }
  0xcf   :  { %494 = vxpose.xlu2.b32.cont [10/16] %v234_v59, 128  ;;  %v109_v59 = vld [vmem:[%s2217_s0 + $0x310] sm:$0xff]  ;;  %v271_v63 = vmul.f32 %v937_v4, %v107_v57 }
  0xd0   :  { %v411_v62 = vpop.trf.xlu2 }
  0xd1   :  { %786 = vst [vmem:[%s2219_s2 + $0x260] sm:$0xff] %v411_v62  ;;  %v272_v62 = vmul.f32 %v934_v3, %v108_v56 }
  0xd2   :  { %v378_v0 = vpop.trf.xlu1  ;;  %v346_v2 = vpop.trf.xlu0 }
  0xd3   :  { %752 = vst [vmem:[%s2219_s2 + $0x150] sm:$0xff] %v378_v0  ;;  %v273_v0 = vmul.f32 %v943_v6, %v109_v59 }
  0xd4   :  { %720 = vst [vmem:[%s2219_s2 + $0x50] sm:$0xff] %v346_v2  ;;  %v114_v2 = vld [vmem:[%s2217_s0 + $0x338] sm:$0xff] }
  0xd6   :  { %463 = vxpose.xlu1.b32.cont [11/16] %v239_v5, 128  ;;  %431 = vxpose.xlu0.b32.cont [11/16] %v238_v7, 128  ;;  %v113_v5 = vld [vmem:[%s2217_s0 + $0x330] sm:$0xff] }
  0xd7   :  { %495 = vxpose.xlu2.b32.cont [11/16] %v240_v8, 128  ;;  %v115_v8 = vld [vmem:[%s2217_s0 + $0x340] sm:$0xff]  ;;  %v277_v12 = vmul.f32 %v937_v4, %v113_v5 }
  0xd8   :  { %v412_v11 = vpop.trf.xlu2 }
  0xd9   :  { %788 = vst [vmem:[%s2219_s2 + $0x270] sm:$0xff] %v412_v11  ;;  %v278_v11 = vmul.f32 %v934_v3, %v114_v2 }
  0xda   :  { %v379_v13 = vpop.trf.xlu1  ;;  %v347_v14 = vpop.trf.xlu0 }
  0xdb   :  { %754 = vst [vmem:[%s2219_s2 + $0x160] sm:$0xff] %v379_v13  ;;  %v279_v13 = vmul.f32 %v943_v6, %v115_v8 }
  0xdc   :  { %722 = vst [vmem:[%s2219_s2 + $0x60] sm:$0xff] %v347_v14  ;;  %v120_v14 = vld [vmem:[%s2217_s0 + $0x368] sm:$0xff] }
  0xde   :  { %464 = vxpose.xlu1.b32.cont [12/16] %v245_v15, 128  ;;  %432 = vxpose.xlu0.b32.cont [12/16] %v244_v16, 128  ;;  %v119_v15 = vld [vmem:[%s2217_s0 + $0x360] sm:$0xff] }
  0xdf   :  { %496 = vxpose.xlu2.b32.cont [12/16] %v246_v17, 128  ;;  %v121_v17 = vld [vmem:[%s2217_s0 + $0x370] sm:$0xff]  ;;  %v283_v21 = vmul.f32 %v937_v4, %v119_v15 }
  0xe0   :  { %v413_v20 = vpop.trf.xlu2 }
  0xe1   :  { %790 = vst [vmem:[%s2219_s2 + $0x280] sm:$0xff] %v413_v20  ;;  %v284_v20 = vmul.f32 %v934_v3, %v120_v14 }
  0xe2   :  { %v380_v22 = vpop.trf.xlu1  ;;  %v348_v23 = vpop.trf.xlu0 }
  0xe3   :  { %756 = vst [vmem:[%s2219_s2 + $0x170] sm:$0xff] %v380_v22  ;;  %v285_v22 = vmul.f32 %v943_v6, %v121_v17 }
  0xe4   :  { %724 = vst [vmem:[%s2219_s2 + $0x70] sm:$0xff] %v348_v23  ;;  %v126_v23 = vld [vmem:[%s2217_s0 + $0x398] sm:$0xff] }
  0xe6   :  { %465 = vxpose.xlu1.b32.cont [13/16] %v251_v24, 128  ;;  %433 = vxpose.xlu0.b32.cont [13/16] %v250_v25, 128  ;;  %v125_v24 = vld [vmem:[%s2217_s0 + $0x390] sm:$0xff] }
  0xe7   :  { %497 = vxpose.xlu2.b32.cont [13/16] %v252_v26, 128  ;;  %v127_v26 = vld [vmem:[%s2217_s0 + $0x3a0] sm:$0xff]  ;;  %v289_v30 = vmul.f32 %v937_v4, %v125_v24 }
  0xe8   :  { %v414_v29 = vpop.trf.xlu2 }
  0xe9   :  { %792 = vst [vmem:[%s2219_s2 + $0x290] sm:$0xff] %v414_v29  ;;  %v290_v29 = vmul.f32 %v934_v3, %v126_v23 }
  0xea   :  { %v381_v31 = vpop.trf.xlu1  ;;  %v349_v32 = vpop.trf.xlu0 }
  0xeb   :  { %758 = vst [vmem:[%s2219_s2 + $0x180] sm:$0xff] %v381_v31  ;;  %v291_v31 = vmul.f32 %v943_v6, %v127_v26 }
  0xec   :  { %726 = vst [vmem:[%s2219_s2 + $0x80] sm:$0xff] %v349_v32  ;;  %v132_v32 = vld [vmem:[%s2217_s0 + $0x3c8] sm:$0xff] }
  0xee   :  { %466 = vxpose.xlu1.b32.cont [14/16] %v257_v33, 128  ;;  %434 = vxpose.xlu0.b32.cont [14/16] %v256_v34, 128  ;;  %v131_v33 = vld [vmem:[%s2217_s0 + $0x3c0] sm:$0xff] }
  0xef   :  { %498 = vxpose.xlu2.b32.cont [14/16] %v258_v35, 128  ;;  %v133_v35 = vld [vmem:[%s2217_s0 + $0x3d0] sm:$0xff]  ;;  %v295_v39 = vmul.f32 %v937_v4, %v131_v33 }
  0xf0   :  { %v415_v38 = vpop.trf.xlu2 }
  0xf1   :  { %794 = vst [vmem:[%s2219_s2 + $0x2a0] sm:$0xff] %v415_v38  ;;  %v296_v38 = vmul.f32 %v934_v3, %v132_v32 }
  0xf2   :  { %v382_v42 = vpop.trf.xlu1  ;;  %v350_v43 = vpop.trf.xlu0 }
  0xf3   :  { %760 = vst [vmem:[%s2219_s2 + $0x190] sm:$0xff] %v382_v42  ;;  %v297_v42 = vmul.f32 %v943_v6, %v133_v35 }
  0xf4   :  { %728 = vst [vmem:[%s2219_s2 + $0x90] sm:$0xff] %v350_v43  ;;  %v138_v43 = vld [vmem:[%s2217_s0 + $0x3f8] sm:$0xff] }
  0xf6   :  { %467 = vxpose.xlu1.b32.cont [15/16] %v263_v45, 128  ;;  %435 = vxpose.xlu0.b32.cont [15/16] %v262_v46, 128  ;;  %v137_v45 = vld [vmem:[%s2217_s0 + $0x3f0] sm:$0xff] }
  0xf7   :  { %499 = vxpose.xlu2.b32.cont [15/16] %v264_v47, 128  ;;  %v139_v47 = vld [vmem:[%s2217_s0 + $0x400] sm:$0xff]  ;;  %v301_v50 = vmul.f32 %v937_v4, %v137_v45 }
  0xf8   :  { %v416_v1 = vpop.trf.xlu2 }
  0xf9   :  { %796 = vst [vmem:[%s2219_s2 + $0x2b0] sm:$0xff] %v416_v1  ;;  %v302_v1 = vmul.f32 %v934_v3, %v138_v43 }
  0xfa   :  { %v383_v51 = vpop.trf.xlu1  ;;  %v351_v52 = vpop.trf.xlu0 }
  0xfb   :  { %762 = vst [vmem:[%s2219_s2 + $0x1a0] sm:$0xff] %v383_v51  ;;  %v303_v51 = vmul.f32 %v943_v6, %v139_v47 }
  0xfc   :  { %730 = vst [vmem:[%s2219_s2 + $0xa0] sm:$0xff] %v351_v52  ;;  %v144_v52 = vld [vmem:[%s2217_s0 + $0x428] sm:$0xff] }
  0xfe   :  { %468 = vxpose.xlu1.b32.end [16/16] %v269_v53, 128  ;;  %436 = vxpose.xlu0.b32.end [16/16] %v268_v54, 128  ;;  %v143_v53 = vld [vmem:[%s2217_s0 + $0x420] sm:$0xff] }
  0xff   :  { %500 = vxpose.xlu2.b32.end [16/16] %v270_v55, 128  ;;  %v145_v55 = vld [vmem:[%s2217_s0 + $0x430] sm:$0xff]  ;;  %v307_v59 = vmul.f32 %v937_v4, %v143_v53 }
 0x100   :  { %v417_v58 = vpop.trf.xlu2 }
 0x101   :  { %798 = vst [vmem:[%s2219_s2 + $0x2c0] sm:$0xff] %v417_v58  ;;  %v308_v58 = vmul.f32 %v934_v3, %v144_v52 }
 0x102   :  { %v384_v60 = vpop.trf.xlu1  ;;  %v352_v61 = vpop.trf.xlu0 }
 0x103   :  { %764 = vst [vmem:[%s2219_s2 + $0x1b0] sm:$0xff] %v384_v60  ;;  %v309_v60 = vmul.f32 %v943_v6, %v145_v55 }
 0x104   :  { %732 = vst [vmem:[%s2219_s2 + $0xb0] sm:$0xff] %v352_v61  ;;  %v150_v61 = vld [vmem:[%s2217_s0 + $0x458] sm:$0xff] }
 0x106   :  { %549 = vxpose.xlu1.b32.start [1/9] (short) %v272_v62, 128  ;;  %517 = vxpose.xlu0.b32.start [1/9] (short) %v271_v63, 128  ;;  %v149_v62 = vld [vmem:[%s2217_s0 + $0x450] sm:$0xff] }
 0x107   :  { %581 = vxpose.xlu2.b32.start [1/9] (short) %v273_v0, 128  ;;  %v151_v0 = vld [vmem:[%s2217_s0 + $0x460] sm:$0xff]  ;;  %v313_v8 = vmul.f32 %v937_v4, %v149_v62 }
 0x108   :  { %v418_v7 = vpop.trf.xlu2 }
 0x109   :  { %800 = vst [vmem:[%s2219_s2 + $0x2d0] sm:$0xff] %v418_v7  ;;  %v314_v7 = vmul.f32 %v934_v3, %v150_v61 }
 0x10a   :  { %v385_v9 = vpop.trf.xlu1  ;;  %v353_v10 = vpop.trf.xlu0 }
 0x10b   :  { %766 = vst [vmem:[%s2219_s2 + $0x1c0] sm:$0xff] %v385_v9  ;;  %v315_v9 = vmul.f32 %v943_v6, %v151_v0 }
 0x10c   :  { %734 = vst [vmem:[%s2219_s2 + $0xc0] sm:$0xff] %v353_v10  ;;  %v156_v10 = vld [vmem:[%s2217_s0 + $0x488] sm:$0xf] }
 0x10e   :  { %550 = vxpose.xlu1.b32.cont [2/9] (short) %v278_v11, 128  ;;  %518 = vxpose.xlu0.b32.cont [2/9] (short) %v277_v12, 128  ;;  %v155_v11 = vld [vmem:[%s2217_s0 + $0x480] sm:$0xf] }
 0x10f   :  { %582 = vxpose.xlu2.b32.cont [2/9] (short) %v279_v13, 128  ;;  %v157_v13 = vld [vmem:[%s2217_s0 + $0x490] sm:$0xf]  ;;  %v319_v17 = vmul.f32 %v937_v4, %v155_v11 }
 0x110   :  { %v419_v16 = vpop.trf.xlu2 }
 0x111   :  { %802 = vst [vmem:[%s2219_s2 + $0x2e0] sm:$0xff] %v419_v16  ;;  %v320_v16 = vmul.f32 %v934_v3, %v156_v10 }
 0x112   :  { %v386_v18 = vpop.trf.xlu1  ;;  %v354_v19 = vpop.trf.xlu0 }
 0x113   :  { %768 = vst [vmem:[%s2219_s2 + $0x1d0] sm:$0xff] %v386_v18  ;;  %v321_v18 = vmul.f32 %v943_v6, %v157_v13 }
 0x114   :  { %736 = vst [vmem:[%s2219_s2 + $0xd0] sm:$0xff] %v354_v19 }
 0x116   :  { %551 = vxpose.xlu1.b32.cont [3/9] (short) %v284_v20, 128  ;;  %519 = vxpose.xlu0.b32.cont [3/9] (short) %v283_v21, 128 }
 0x117   :  { %583 = vxpose.xlu2.b32.cont [3/9] (short) %v285_v22, 128 }
 0x118   :  { %v420_v25 = vpop.trf.xlu2 }
 0x119   :  { %804 = vst [vmem:[%s2219_s2 + $0x2f0] sm:$0xff] %v420_v25 }
 0x11a   :  { %v387_v27 = vpop.trf.xlu1  ;;  %v355_v28 = vpop.trf.xlu0 }
 0x11b   :  { %770 = vst [vmem:[%s2219_s2 + $0x1e0] sm:$0xff] %v387_v27 }
 0x11c   :  { %738 = vst [vmem:[%s2219_s2 + $0xe0] sm:$0xff] %v355_v28 }
 0x11e   :  { %552 = vxpose.xlu1.b32.cont [4/9] (short) %v290_v29, 128  ;;  %520 = vxpose.xlu0.b32.cont [4/9] (short) %v289_v30, 128 }
 0x11f   :  { %584 = vxpose.xlu2.b32.cont [4/9] (short) %v291_v31, 128 }
 0x120   :  { %v501_v34 = vpop.trf.xlu2 }
 0x121   :  { %870 = vst [vmem:[%s2219_s2 + $0x500] sm:$0xff] %v501_v34 }
 0x122   :  { %v388_v36 = vpop.trf.xlu1  ;;  %v356_v37 = vpop.trf.xlu0 }
 0x123   :  { %772 = vst [vmem:[%s2219_s2 + $0x1f0] sm:$0xff] %v388_v36 }
 0x124   :  { %740 = vst [vmem:[%s2219_s2 + $0xf0] sm:$0xff] %v356_v37  ;;  %v111_v37 = vld [vmem:[%s2217_s0 + $0x320] sm:$0xff] }
 0x126   :  { %553 = vxpose.xlu1.b32.cont [5/9] (short) %v296_v38, 128  ;;  %521 = vxpose.xlu0.b32.cont [5/9] (short) %v295_v39, 128  ;;  %v110_v38 = vld [vmem:[%s2217_s0 + $0x318] sm:$0xff] }
 0x127   :  { %585 = vxpose.xlu2.b32.cont [5/9] (short) %v297_v42, 128  ;;  %v112_v42 = vld [vmem:[%s2217_s0 + $0x328] sm:$0xff]  ;;  %v274_v47 = vmul.f32 %v1132_v41, %v110_v38 }
 0x128   :  { %v502_v46 = vpop.trf.xlu2 }
 0x129   :  { %872 = vst [vmem:[%s2219_s2 + $0x510] sm:$0xff] %v502_v46  ;;  %v275_v46 = vmul.f32 %v1129_v40, %v111_v37 }
 0x12a   :  { %v469_v48 = vpop.trf.xlu1  ;;  %v437_v49 = vpop.trf.xlu0 }
 0x12b   :  { %838 = vst [vmem:[%s2219_s2 + $0x400] sm:$0xff] %v469_v48  ;;  %v276_v48 = vmul.f32 %v1141_v44, %v112_v42  ;;  %v152_v42 = vld [vmem:[%s2217_s0 + $0x468] sm:$0xff] }
 0x12c   :  { %806 = vst [vmem:[%s2219_s2 + $0x300] sm:$0xff] %v437_v49  ;;  %v117_v49 = vld [vmem:[%s2217_s0 + $0x350] sm:$0xff] }
 0x12e   :  { %554 = vxpose.xlu1.b32.cont [6/9] (short) %v302_v1, 128  ;;  %522 = vxpose.xlu0.b32.cont [6/9] (short) %v301_v50, 128  ;;  %v116_v1 = vld [vmem:[%s2217_s0 + $0x348] sm:$0xff] }
 0x12f   :  { %586 = vxpose.xlu2.b32.cont [6/9] (short) %v303_v51, 128  ;;  %v118_v51 = vld [vmem:[%s2217_s0 + $0x358] sm:$0xff]  ;;  %v280_v55 = vmul.f32 %v1132_v41, %v116_v1 }
 0x130   :  { %v503_v54 = vpop.trf.xlu2 }
 0x131   :  { %874 = vst [vmem:[%s2219_s2 + $0x520] sm:$0xff] %v503_v54  ;;  %v281_v54 = vmul.f32 %v1129_v40, %v117_v49  ;;  %v316_v49 = vmul.f32 %v1132_v41, %v152_v42 }
 0x132   :  { %v470_v56 = vpop.trf.xlu1  ;;  %v438_v57 = vpop.trf.xlu0 }
 0x133   :  { %840 = vst [vmem:[%s2219_s2 + $0x410] sm:$0xff] %v470_v56  ;;  %v282_v56 = vmul.f32 %v1141_v44, %v118_v51  ;;  %v158_v51 = vld [vmem:[%s2217_s0 + $0x498] sm:$0xf] }
 0x134   :  { %808 = vst [vmem:[%s2219_s2 + $0x310] sm:$0xff] %v438_v57  ;;  %v123_v57 = vld [vmem:[%s2217_s0 + $0x380] sm:$0xff] }
 0x136   :  { %555 = vxpose.xlu1.b32.cont [7/9] (short) %v308_v58, 128  ;;  %523 = vxpose.xlu0.b32.cont [7/9] (short) %v307_v59, 128  ;;  %v122_v58 = vld [vmem:[%s2217_s0 + $0x378] sm:$0xff] }
 0x137   :  { %587 = vxpose.xlu2.b32.cont [7/9] (short) %v309_v60, 128  ;;  %v124_v60 = vld [vmem:[%s2217_s0 + $0x388] sm:$0xff]  ;;  %v286_v0 = vmul.f32 %v1132_v41, %v122_v58 }
 0x138   :  { %v504_v63 = vpop.trf.xlu2 }
 0x139   :  { %876 = vst [vmem:[%s2219_s2 + $0x530] sm:$0xff] %v504_v63  ;;  %v287_v63 = vmul.f32 %v1129_v40, %v123_v57  ;;  %v322_v57 = vmul.f32 %v1132_v41, %v158_v51 }
 0x13a   :  { %v471_v2 = vpop.trf.xlu1  ;;  %v439_v5 = vpop.trf.xlu0 }
 0x13b   :  { %842 = vst [vmem:[%s2219_s2 + $0x420] sm:$0xff] %v471_v2  ;;  %v288_v2 = vmul.f32 %v1141_v44, %v124_v60 }
 0x13c   :  { %810 = vst [vmem:[%s2219_s2 + $0x320] sm:$0xff] %v439_v5  ;;  %v129_v5 = vld [vmem:[%s2217_s0 + $0x3b0] sm:$0xff] }
 0x13e   :  { %556 = vxpose.xlu1.b32.cont [8/9] (short) %v314_v7, 128  ;;  %524 = vxpose.xlu0.b32.cont [8/9] (short) %v313_v8, 128  ;;  %v128_v7 = vld [vmem:[%s2217_s0 + $0x3a8] sm:$0xff] }
 0x13f   :  { %588 = vxpose.xlu2.b32.cont [8/9] (short) %v315_v9, 128  ;;  %v130_v9 = vld [vmem:[%s2217_s0 + $0x3b8] sm:$0xff]  ;;  %v292_v13 = vmul.f32 %v1132_v41, %v128_v7 }
 0x140   :  { %v505_v12 = vpop.trf.xlu2 }
 0x141   :  { %878 = vst [vmem:[%s2219_s2 + $0x540] sm:$0xff] %v505_v12  ;;  %v293_v12 = vmul.f32 %v1129_v40, %v129_v5 }
 0x142   :  { %v472_v14 = vpop.trf.xlu1  ;;  %v440_v15 = vpop.trf.xlu0 }
 0x143   :  { %844 = vst [vmem:[%s2219_s2 + $0x430] sm:$0xff] %v472_v14  ;;  %v294_v14 = vmul.f32 %v1141_v44, %v130_v9 }
 0x144   :  { %812 = vst [vmem:[%s2219_s2 + $0x330] sm:$0xff] %v440_v15  ;;  %v135_v15 = vld [vmem:[%s2217_s0 + $0x3e0] sm:$0xff] }
 0x146   :  { %557 = vxpose.xlu1.b32.end [9/9] (short) %v320_v16, 128  ;;  %525 = vxpose.xlu0.b32.end [9/9] (short) %v319_v17, 128  ;;  %v134_v16 = vld [vmem:[%s2217_s0 + $0x3d8] sm:$0xff] }
 0x147   :  { %589 = vxpose.xlu2.b32.end [9/9] (short) %v321_v18, 128  ;;  %v136_v18 = vld [vmem:[%s2217_s0 + $0x3e8] sm:$0xff] }
 0x148   :  { %v506_v19 = vpop.trf.xlu2 }
 0x149   :  { %880 = vst [vmem:[%s2219_s2 + $0x550] sm:$0xff] %v506_v19 }
 0x14a   :  { %v473_v3 = vpop.trf.xlu1  ;;  %v441_v4 = vpop.trf.xlu0 }
 0x14b   :  { %846 = vst [vmem:[%s2219_s2 + $0x440] sm:$0xff] %v473_v3 }
 0x14c   :  { %814 = vst [vmem:[%s2219_s2 + $0x340] sm:$0xff] %v441_v4  ;;  %v299_v4 = vmul.f32 %v1129_v40, %v135_v15 }
 0x150   :  { %v507_v6 = vpop.trf.xlu2 }
 0x151   :  { %882 = vst [vmem:[%s2219_s2 + $0x560] sm:$0xff] %v507_v6  ;;  %v298_v6 = vmul.f32 %v1132_v41, %v134_v16 }
 0x152   :  { %v474_v20 = vpop.trf.xlu1  ;;  %v442_v21 = vpop.trf.xlu0 }
 0x153   :  { %848 = vst [vmem:[%s2219_s2 + $0x450] sm:$0xff] %v474_v20  ;;  %v300_v20 = vmul.f32 %v1141_v44, %v136_v18 }
 0x154   :  { %816 = vst [vmem:[%s2219_s2 + $0x350] sm:$0xff] %v442_v21  ;;  %v141_v21 = vld [vmem:[%s2217_s0 + $0x410] sm:$0xff] }
 0x158   :  { %v508_v22 = vpop.trf.xlu2 }
 0x159   :  { %884 = vst [vmem:[%s2219_s2 + $0x570] sm:$0xff] %v508_v22  ;;  %v140_v22 = vld [vmem:[%s2217_s0 + $0x408] sm:$0xff] }
 0x15a   :  { %v475_v23 = vpop.trf.xlu1  ;;  %v443_v24 = vpop.trf.xlu0 }
 0x15b   :  { %850 = vst [vmem:[%s2219_s2 + $0x460] sm:$0xff] %v475_v23 }
 0x15c   :  { %818 = vst [vmem:[%s2219_s2 + $0x360] sm:$0xff] %v443_v24  ;;  %v142_v24 = vld [vmem:[%s2217_s0 + $0x418] sm:$0xff] }
 0x160   :  { %v509_v25 = vpop.trf.xlu2 }
 0x161   :  { %886 = vst [vmem:[%s2219_s2 + $0x580] sm:$0xff] %v509_v25 }
 0x162   :  { %v476_v26 = vpop.trf.xlu1  ;;  %v444_v27 = vpop.trf.xlu0 }
 0x163   :  { %852 = vst [vmem:[%s2219_s2 + $0x470] sm:$0xff] %v476_v26 }
 0x164   :  { %820 = vst [vmem:[%s2219_s2 + $0x370] sm:$0xff] %v444_v27  ;;  %v305_v27 = vmul.f32 %v1129_v40, %v141_v21 }
 0x168   :  { %v510_v28 = vpop.trf.xlu2 }
 0x169   :  { %888 = vst [vmem:[%s2219_s2 + $0x590] sm:$0xff] %v510_v28  ;;  %v304_v28 = vmul.f32 %v1132_v41, %v140_v22 }
 0x16a   :  { %v477_v29 = vpop.trf.xlu1  ;;  %v445_v30 = vpop.trf.xlu0 }
 0x16b   :  { %854 = vst [vmem:[%s2219_s2 + $0x480] sm:$0xff] %v477_v29  ;;  %v306_v29 = vmul.f32 %v1141_v44, %v142_v24 }
 0x16c   :  { %822 = vst [vmem:[%s2219_s2 + $0x380] sm:$0xff] %v445_v30  ;;  %v147_v30 = vld [vmem:[%s2217_s0 + $0x440] sm:$0xff] }
 0x170   :  { %v511_v31 = vpop.trf.xlu2 }
 0x171   :  { %890 = vst [vmem:[%s2219_s2 + $0x5a0] sm:$0xff] %v511_v31  ;;  %v146_v31 = vld [vmem:[%s2217_s0 + $0x438] sm:$0xff] }
 0x172   :  { %v478_v32 = vpop.trf.xlu1  ;;  %v446_v33 = vpop.trf.xlu0  ;;  %v310_v37 = vmul.f32 %v1132_v41, %v146_v31 }
 0x173   :  { %856 = vst [vmem:[%s2219_s2 + $0x490] sm:$0xff] %v478_v32 }
 0x174   :  { %824 = vst [vmem:[%s2219_s2 + $0x390] sm:$0xff] %v446_v33  ;;  %v148_v33 = vld [vmem:[%s2217_s0 + $0x448] sm:$0xff] }
 0x175   :  { %v312_v38 = vmul.f32 %v1141_v44, %v148_v33 }
 0x178   :  { %v512_v34 = vpop.trf.xlu2 }
 0x179   :  { %892 = vst [vmem:[%s2219_s2 + $0x5b0] sm:$0xff] %v512_v34 }
 0x17a   :  { %v479_v35 = vpop.trf.xlu1  ;;  %v447_v36 = vpop.trf.xlu0 }
 0x17b   :  { %858 = vst [vmem:[%s2219_s2 + $0x4a0] sm:$0xff] %v479_v35 }
 0x17c   :  { %826 = vst [vmem:[%s2219_s2 + $0x3a0] sm:$0xff] %v447_v36  ;;  %v311_v36 = vmul.f32 %v1129_v40, %v147_v30 }
 0x180   :  { %v513_v39 = vpop.trf.xlu2 }
 0x181   :  { %894 = vst [vmem:[%s2219_s2 + $0x5c0] sm:$0xff] %v513_v39  ;;  %v153_v39 = vld [vmem:[%s2217_s0 + $0x470] sm:$0xff] }
 0x182   :  { %v480_v43 = vpop.trf.xlu1  ;;  %v448_v45 = vpop.trf.xlu0 }
 0x183   :  { %860 = vst [vmem:[%s2219_s2 + $0x4b0] sm:$0xff] %v480_v43 }
 0x184   :  { %828 = vst [vmem:[%s2219_s2 + $0x3b0] sm:$0xff] %v448_v45  ;;  %v154_v45 = vld [vmem:[%s2217_s0 + $0x478] sm:$0xff] }
 0x185   :  { %v318_v1 = vmul.f32 %v1141_v44, %v154_v45 }
 0x186   :  { %645 = vxpose.xlu1.b32.start [1/9] (short) %v275_v46, 128  ;;  %613 = vxpose.xlu0.b32.start [1/9] (short) %v274_v47, 128 }
 0x187   :  { %677 = vxpose.xlu2.b32.start [1/9] (short) %v276_v48, 128  ;;  %v317_v48 = vmul.f32 %v1129_v40, %v153_v39 }
 0x188   :  { %v514_v50 = vpop.trf.xlu2 }
 0x189   :  { %896 = vst [vmem:[%s2219_s2 + $0x5d0] sm:$0xff] %v514_v50  ;;  %v159_v50 = vld [vmem:[%s2217_s0 + $0x4a0] sm:$0xf] }
 0x18a   :  { %v481_v52 = vpop.trf.xlu1  ;;  %v449_v53 = vpop.trf.xlu0 }
 0x18b   :  { %862 = vst [vmem:[%s2219_s2 + $0x4c0] sm:$0xff] %v481_v52 }
 0x18c   :  { %830 = vst [vmem:[%s2219_s2 + $0x3c0] sm:$0xff] %v449_v53  ;;  %v160_v53 = vld [vmem:[%s2217_s0 + $0x4a8] sm:$0xf] }
 0x18d   :  { %v324_v58 = vmul.f32 %v1141_v44, %v160_v53 }
 0x18e   :  { %646 = vxpose.xlu1.b32.cont [2/9] (short) %v281_v54, 128  ;;  %614 = vxpose.xlu0.b32.cont [2/9] (short) %v280_v55, 128 }
 0x18f   :  { %678 = vxpose.xlu2.b32.cont [2/9] (short) %v282_v56, 128  ;;  %v323_v56 = vmul.f32 %v1129_v40, %v159_v50 }
 0x190   :  { %v515_v59 = vpop.trf.xlu2 }
 0x191   :  { %898 = vst [vmem:[%s2219_s2 + $0x5e0] sm:$0xff] %v515_v59 }
 0x192   :  { %v482_v61 = vpop.trf.xlu1  ;;  %v450_v62 = vpop.trf.xlu0 }
 0x193   :  { %864 = vst [vmem:[%s2219_s2 + $0x4d0] sm:$0xff] %v482_v61 }
 0x194   :  { %832 = vst [vmem:[%s2219_s2 + $0x3d0] sm:$0xff] %v450_v62 }
 0x196   :  { %647 = vxpose.xlu1.b32.cont [3/9] (short) %v287_v63, 128  ;;  %615 = vxpose.xlu0.b32.cont [3/9] (short) %v286_v0, 128 }
 0x197   :  { %679 = vxpose.xlu2.b32.cont [3/9] (short) %v288_v2, 128 }
 0x198   :  { %v516_v8 = vpop.trf.xlu2 }
 0x199   :  { %900 = vst [vmem:[%s2219_s2 + $0x5f0] sm:$0xff] %v516_v8 }
 0x19a   :  { %v483_v10 = vpop.trf.xlu1  ;;  %v451_v11 = vpop.trf.xlu0 }
 0x19b   :  { %866 = vst [vmem:[%s2219_s2 + $0x4e0] sm:$0xff] %v483_v10 }
 0x19c   :  { %834 = vst [vmem:[%s2219_s2 + $0x3e0] sm:$0xff] %v451_v11 }
 0x19e   :  { %648 = vxpose.xlu1.b32.cont [4/9] (short) %v293_v12, 128  ;;  %616 = vxpose.xlu0.b32.cont [4/9] (short) %v292_v13, 128 }
 0x19f   :  { %680 = vxpose.xlu2.b32.cont [4/9] (short) %v294_v14, 128 }
 0x1a0   :  { %v597_v17 = vpop.trf.xlu2 }
 0x1a1   :  { %775 = vst.msk [vmem:[%s2219_s2 + $0x208] sm:$0xff] %vm710_vm0, %v597_v17 }
 0x1a2   :  { %v484_v19 = vpop.trf.xlu1  ;;  %v452_v3 = vpop.trf.xlu0 }
 0x1a3   :  { %868 = vst [vmem:[%s2219_s2 + $0x4f0] sm:$0xff] %v484_v19 }
 0x1a4   :  { %836 = vst [vmem:[%s2219_s2 + $0x3f0] sm:$0xff] %v452_v3 }
 0x1a6   :  { %649 = vxpose.xlu1.b32.cont [5/9] (short) %v299_v4, 128  ;;  %617 = vxpose.xlu0.b32.cont [5/9] (short) %v298_v6, 128 }
 0x1a7   :  { %681 = vxpose.xlu2.b32.cont [5/9] (short) %v300_v20, 128 }
 0x1a8   :  { %v598_v23 = vpop.trf.xlu2 }
 0x1a9   :  { %777 = vst.msk [vmem:[%s2219_s2 + $0x218] sm:$0xff] %vm710_vm0, %v598_v23 }
 0x1aa   :  { %v565_v25 = vpop.trf.xlu1  ;;  %v533_v26 = vpop.trf.xlu0 }
 0x1ab   :  { %743 = vst.msk [vmem:[%s2219_s2 + $0x108] sm:$0xff] %vm710_vm0, %v565_v25 }
 0x1ac   :  { %711 = vst.msk [vmem:[%s2219_s2 + $0x8] sm:$0xff] %vm710_vm0, %v533_v26 }
 0x1ae   :  { %650 = vxpose.xlu1.b32.cont [6/9] (short) %v305_v27, 128  ;;  %618 = vxpose.xlu0.b32.cont [6/9] (short) %v304_v28, 128 }
 0x1af   :  { %682 = vxpose.xlu2.b32.cont [6/9] (short) %v306_v29, 128 }
 0x1b0   :  { %v599_v32 = vpop.trf.xlu2 }
 0x1b1   :  { %779 = vst.msk [vmem:[%s2219_s2 + $0x228] sm:$0xff] %vm710_vm0, %v599_v32 }
 0x1b2   :  { %v566_v34 = vpop.trf.xlu1  ;;  %v534_v35 = vpop.trf.xlu0 }
 0x1b3   :  { %745 = vst.msk [vmem:[%s2219_s2 + $0x118] sm:$0xff] %vm710_vm0, %v566_v34 }
 0x1b4   :  { %713 = vst.msk [vmem:[%s2219_s2 + $0x18] sm:$0xff] %vm710_vm0, %v534_v35 }
 0x1b6   :  { %651 = vxpose.xlu1.b32.cont [7/9] (short) %v311_v36, 128  ;;  %619 = vxpose.xlu0.b32.cont [7/9] (short) %v310_v37, 128 }
 0x1b7   :  { %683 = vxpose.xlu2.b32.cont [7/9] (short) %v312_v38, 128 }
 0x1b8   :  { %v600_v43 = vpop.trf.xlu2 }
 0x1b9   :  { %781 = vst.msk [vmem:[%s2219_s2 + $0x238] sm:$0xff] %vm710_vm0, %v600_v43 }
 0x1ba   :  { %v567_v46 = vpop.trf.xlu1  ;;  %v535_v47 = vpop.trf.xlu0 }
 0x1bb   :  { %747 = vst.msk [vmem:[%s2219_s2 + $0x128] sm:$0xff] %vm710_vm0, %v567_v46 }
 0x1bc   :  { %715 = vst.msk [vmem:[%s2219_s2 + $0x28] sm:$0xff] %vm710_vm0, %v535_v47 }
 0x1be   :  { %652 = vxpose.xlu1.b32.cont [8/9] (short) %v317_v48, 128  ;;  %620 = vxpose.xlu0.b32.cont [8/9] (short) %v316_v49, 128 }
 0x1bf   :  { %684 = vxpose.xlu2.b32.cont [8/9] (short) %v318_v1, 128 }
 0x1c0   :  { %v601_v52 = vpop.trf.xlu2 }
 0x1c1   :  { %783 = vst.msk [vmem:[%s2219_s2 + $0x248] sm:$0xff] %vm710_vm0, %v601_v52 }
 0x1c2   :  { %v568_v54 = vpop.trf.xlu1  ;;  %v536_v55 = vpop.trf.xlu0 }
 0x1c3   :  { %749 = vst.msk [vmem:[%s2219_s2 + $0x138] sm:$0xff] %vm710_vm0, %v568_v54 }
 0x1c4   :  { %717 = vst.msk [vmem:[%s2219_s2 + $0x38] sm:$0xff] %vm710_vm0, %v536_v55 }
 0x1c6   :  { %653 = vxpose.xlu1.b32.end [9/9] (short) %v323_v56, 128  ;;  %621 = vxpose.xlu0.b32.end [9/9] (short) %v322_v57, 128 }
 0x1c7   :  { %685 = vxpose.xlu2.b32.end [9/9] (short) %v324_v58, 128 }
 0x1c8   :  { %v602_v59 = vpop.trf.xlu2 }
 0x1c9   :  { %785 = vst.msk [vmem:[%s2219_s2 + $0x258] sm:$0xff] %vm710_vm0, %v602_v59 }
 0x1ca   :  { %v569_v40 = vpop.trf.xlu1  ;;  %v537_v41 = vpop.trf.xlu0 }
 0x1cb   :  { %751 = vst.msk [vmem:[%s2219_s2 + $0x148] sm:$0xff] %vm710_vm0, %v569_v40 }
 0x1cc   :  { %719 = vst.msk [vmem:[%s2219_s2 + $0x48] sm:$0xff] %vm710_vm0, %v537_v41 }
 0x1d0   :  { %v603_v44 = vpop.trf.xlu2 }
 0x1d1   :  { %787 = vst.msk [vmem:[%s2219_s2 + $0x268] sm:$0xff] %vm710_vm0, %v603_v44 }
 0x1d2   :  { %v570_v60 = vpop.trf.xlu1  ;;  %v538_v61 = vpop.trf.xlu0 }
 0x1d3   :  { %753 = vst.msk [vmem:[%s2219_s2 + $0x158] sm:$0xff] %vm710_vm0, %v570_v60 }
 0x1d4   :  { %721 = vst.msk [vmem:[%s2219_s2 + $0x58] sm:$0xff] %vm710_vm0, %v538_v61 }
 0x1d8   :  { %v604_v62 = vpop.trf.xlu2 }
 0x1d9   :  { %789 = vst.msk [vmem:[%s2219_s2 + $0x278] sm:$0xff] %vm710_vm0, %v604_v62 }
 0x1da   :  { %v571_v63 = vpop.trf.xlu1  ;;  %v539_v0 = vpop.trf.xlu0 }
 0x1db   :  { %755 = vst.msk [vmem:[%s2219_s2 + $0x168] sm:$0xff] %vm710_vm0, %v571_v63 }
 0x1dc   :  { %723 = vst.msk [vmem:[%s2219_s2 + $0x68] sm:$0xff] %vm710_vm0, %v539_v0 }
 0x1e0   :  { %v605_v2 = vpop.trf.xlu2 }
 0x1e1   :  { %791 = vst.msk [vmem:[%s2219_s2 + $0x288] sm:$0xff] %vm710_vm0, %v605_v2 }
 0x1e2   :  { %v572_v5 = vpop.trf.xlu1  ;;  %v540_v7 = vpop.trf.xlu0 }
 0x1e3   :  { %757 = vst.msk [vmem:[%s2219_s2 + $0x178] sm:$0xff] %vm710_vm0, %v572_v5 }
 0x1e4   :  { %725 = vst.msk [vmem:[%s2219_s2 + $0x78] sm:$0xff] %vm710_vm0, %v540_v7 }
 0x1e8   :  { %v606_v8 = vpop.trf.xlu2 }
 0x1e9   :  { %793 = vst.msk [vmem:[%s2219_s2 + $0x298] sm:$0xff] %vm710_vm0, %v606_v8 }
 0x1ea   :  { %v573_v9 = vpop.trf.xlu1  ;;  %v541_v10 = vpop.trf.xlu0 }
 0x1eb   :  { %759 = vst.msk [vmem:[%s2219_s2 + $0x188] sm:$0xff] %vm710_vm0, %v573_v9 }
 0x1ec   :  { %727 = vst.msk [vmem:[%s2219_s2 + $0x88] sm:$0xff] %vm710_vm0, %v541_v10 }
 0x1f0   :  { %v607_v11 = vpop.trf.xlu2 }
 0x1f1   :  { %795 = vst.msk [vmem:[%s2219_s2 + $0x2a8] sm:$0xff] %vm710_vm0, %v607_v11 }
 0x1f2   :  { %v574_v12 = vpop.trf.xlu1  ;;  %v542_v13 = vpop.trf.xlu0 }
 0x1f3   :  { %761 = vst.msk [vmem:[%s2219_s2 + $0x198] sm:$0xff] %vm710_vm0, %v574_v12 }
 0x1f4   :  { %729 = vst.msk [vmem:[%s2219_s2 + $0x98] sm:$0xff] %vm710_vm0, %v542_v13 }
 0x1f8   :  { %v608_v14 = vpop.trf.xlu2 }
 0x1f9   :  { %797 = vst.msk [vmem:[%s2219_s2 + $0x2b8] sm:$0xff] %vm710_vm0, %v608_v14 }
 0x1fa   :  { %v575_v15 = vpop.trf.xlu1  ;;  %v543_v16 = vpop.trf.xlu0 }
 0x1fb   :  { %763 = vst.msk [vmem:[%s2219_s2 + $0x1a8] sm:$0xff] %vm710_vm0, %v575_v15 }
 0x1fc   :  { %731 = vst.msk [vmem:[%s2219_s2 + $0xa8] sm:$0xff] %vm710_vm0, %v543_v16 }
 0x200   :  { %v609_v17 = vpop.trf.xlu2 }
 0x201   :  { %799 = vst.msk [vmem:[%s2219_s2 + $0x2c8] sm:$0xff] %vm710_vm0, %v609_v17 }
 0x202   :  { %v576_v18 = vpop.trf.xlu1  ;;  %v544_v19 = vpop.trf.xlu0 }
 0x203   :  { %765 = vst.msk [vmem:[%s2219_s2 + $0x1b8] sm:$0xff] %vm710_vm0, %v576_v18 }
 0x204   :  { %733 = vst.msk [vmem:[%s2219_s2 + $0xb8] sm:$0xff] %vm710_vm0, %v544_v19 }
 0x208   :  { %v610_v3 = vpop.trf.xlu2 }
 0x209   :  { %801 = vst.msk [vmem:[%s2219_s2 + $0x2d8] sm:$0xff] %vm710_vm0, %v610_v3 }
 0x20a   :  { %v577_v4 = vpop.trf.xlu1  ;;  %v545_v6 = vpop.trf.xlu0 }
 0x20b   :  { %767 = vst.msk [vmem:[%s2219_s2 + $0x1c8] sm:$0xff] %vm710_vm0, %v577_v4 }
 0x20c   :  { %735 = vst.msk [vmem:[%s2219_s2 + $0xc8] sm:$0xff] %vm710_vm0, %v545_v6 }
 0x210   :  { %v611_v20 = vpop.trf.xlu2 }
 0x211   :  { %803 = vst.msk [vmem:[%s2219_s2 + $0x2e8] sm:$0xff] %vm710_vm0, %v611_v20 }
 0x212   :  { %v578_v21 = vpop.trf.xlu1  ;;  %v546_v22 = vpop.trf.xlu0 }
 0x213   :  { %769 = vst.msk [vmem:[%s2219_s2 + $0x1d8] sm:$0xff] %vm710_vm0, %v578_v21 }
 0x214   :  { %737 = vst.msk [vmem:[%s2219_s2 + $0xd8] sm:$0xff] %vm710_vm0, %v546_v22 }
 0x218   :  { %v612_v23 = vpop.trf.xlu2 }
 0x219   :  { %805 = vst.msk [vmem:[%s2219_s2 + $0x2f8] sm:$0xff] %vm710_vm0, %v612_v23 }
 0x21a   :  { %v579_v24 = vpop.trf.xlu1  ;;  %v547_v25 = vpop.trf.xlu0 }
 0x21b   :  { %771 = vst.msk [vmem:[%s2219_s2 + $0x1e8] sm:$0xff] %vm710_vm0, %v579_v24 }
 0x21c   :  { %739 = vst.msk [vmem:[%s2219_s2 + $0xe8] sm:$0xff] %vm710_vm0, %v547_v25 }
 0x220   :  { %v693_v26 = vpop.trf.xlu2 }
 0x221   :  { %871 = vst.msk [vmem:[%s2219_s2 + $0x508] sm:$0xff] %vm710_vm0, %v693_v26 }
 0x222   :  { %v580_v27 = vpop.trf.xlu1  ;;  %v548_v28 = vpop.trf.xlu0 }
 0x223   :  { %773 = vst.msk [vmem:[%s2219_s2 + $0x1f8] sm:$0xff] %vm710_vm0, %v580_v27 }
 0x224   :  { %741 = vst.msk [vmem:[%s2219_s2 + $0xf8] sm:$0xff] %vm710_vm0, %v548_v28 }
 0x228   :  { %v694_v29 = vpop.trf.xlu2 }
 0x229   :  { %873 = vst.msk [vmem:[%s2219_s2 + $0x518] sm:$0xff] %vm710_vm0, %v694_v29 }
 0x22a   :  { %v661_v30 = vpop.trf.xlu1  ;;  %v629_v31 = vpop.trf.xlu0 }
 0x22b   :  { %839 = vst.msk [vmem:[%s2219_s2 + $0x408] sm:$0xff] %vm710_vm0, %v661_v30 }
 0x22c   :  { %807 = vst.msk [vmem:[%s2219_s2 + $0x308] sm:$0xff] %vm710_vm0, %v629_v31 }
 0x230   :  { %v695_v32 = vpop.trf.xlu2 }
 0x231   :  { %875 = vst.msk [vmem:[%s2219_s2 + $0x528] sm:$0xff] %vm710_vm0, %v695_v32 }
 0x232   :  { %v662_v33 = vpop.trf.xlu1  ;;  %v630_v34 = vpop.trf.xlu0 }
 0x233   :  { %841 = vst.msk [vmem:[%s2219_s2 + $0x418] sm:$0xff] %vm710_vm0, %v662_v33 }
 0x234   :  { %809 = vst.msk [vmem:[%s2219_s2 + $0x318] sm:$0xff] %vm710_vm0, %v630_v34 }
 0x238   :  { %v696_v35 = vpop.trf.xlu2 }
 0x239   :  { %877 = vst.msk [vmem:[%s2219_s2 + $0x538] sm:$0xff] %vm710_vm0, %v696_v35 }
 0x23a   :  { %v663_v36 = vpop.trf.xlu1  ;;  %v631_v37 = vpop.trf.xlu0 }
 0x23b   :  { %843 = vst.msk [vmem:[%s2219_s2 + $0x428] sm:$0xff] %vm710_vm0, %v663_v36 }
 0x23c   :  { %811 = vst.msk [vmem:[%s2219_s2 + $0x328] sm:$0xff] %vm710_vm0, %v631_v37 }
 0x240   :  { %v697_v38 = vpop.trf.xlu2 }
 0x241   :  { %879 = vst.msk [vmem:[%s2219_s2 + $0x548] sm:$0xff] %vm710_vm0, %v697_v38 }
 0x242   :  { %v664_v39 = vpop.trf.xlu1  ;;  %v632_v42 = vpop.trf.xlu0 }
 0x243   :  { %845 = vst.msk [vmem:[%s2219_s2 + $0x438] sm:$0xff] %vm710_vm0, %v664_v39 }
 0x244   :  { %813 = vst.msk [vmem:[%s2219_s2 + $0x338] sm:$0xff] %vm710_vm0, %v632_v42 }
 0x248   :  { %v698_v43 = vpop.trf.xlu2 }
 0x249   :  { %881 = vst.msk [vmem:[%s2219_s2 + $0x558] sm:$0xff] %vm710_vm0, %v698_v43 }
 0x24a   :  { %v665_v45 = vpop.trf.xlu1  ;;  %v633_v46 = vpop.trf.xlu0 }
 0x24b   :  { %847 = vst.msk [vmem:[%s2219_s2 + $0x448] sm:$0xff] %vm710_vm0, %v665_v45 }
 0x24c   :  { %815 = vst.msk [vmem:[%s2219_s2 + $0x348] sm:$0xff] %vm710_vm0, %v633_v46 }
 0x250   :  { %v699_v47 = vpop.trf.xlu2 }
 0x251   :  { %883 = vst.msk [vmem:[%s2219_s2 + $0x568] sm:$0xff] %vm710_vm0, %v699_v47 }
 0x252   :  { %v666_v48 = vpop.trf.xlu1  ;;  %v634_v49 = vpop.trf.xlu0 }
 0x253   :  { %849 = vst.msk [vmem:[%s2219_s2 + $0x458] sm:$0xff] %vm710_vm0, %v666_v48 }
 0x254   :  { %817 = vst.msk [vmem:[%s2219_s2 + $0x358] sm:$0xff] %vm710_vm0, %v634_v49 }
 0x258   :  { %v700_v1 = vpop.trf.xlu2 }
 0x259   :  { %885 = vst.msk [vmem:[%s2219_s2 + $0x578] sm:$0xff] %vm710_vm0, %v700_v1 }
 0x25a   :  { %v667_v50 = vpop.trf.xlu1  ;;  %v635_v51 = vpop.trf.xlu0 }
 0x25b   :  { %851 = vst.msk [vmem:[%s2219_s2 + $0x468] sm:$0xff] %vm710_vm0, %v667_v50 }
 0x25c   :  { %819 = vst.msk [vmem:[%s2219_s2 + $0x368] sm:$0xff] %vm710_vm0, %v635_v51 }
 0x260   :  { %v701_v52 = vpop.trf.xlu2 }
 0x261   :  { %887 = vst.msk [vmem:[%s2219_s2 + $0x588] sm:$0xff] %vm710_vm0, %v701_v52 }
 0x262   :  { %v668_v53 = vpop.trf.xlu1  ;;  %v636_v54 = vpop.trf.xlu0 }
 0x263   :  { %853 = vst.msk [vmem:[%s2219_s2 + $0x478] sm:$0xff] %vm710_vm0, %v668_v53 }
 0x264   :  { %821 = vst.msk [vmem:[%s2219_s2 + $0x378] sm:$0xff] %vm710_vm0, %v636_v54 }
 0x268   :  { %v702_v55 = vpop.trf.xlu2 }
 0x269   :  { %889 = vst.msk [vmem:[%s2219_s2 + $0x598] sm:$0xff] %vm710_vm0, %v702_v55 }
 0x26a   :  { %v669_v56 = vpop.trf.xlu1  ;;  %v637_v57 = vpop.trf.xlu0 }
 0x26b   :  { %855 = vst.msk [vmem:[%s2219_s2 + $0x488] sm:$0xff] %vm710_vm0, %v669_v56 }
 0x26c   :  { %823 = vst.msk [vmem:[%s2219_s2 + $0x388] sm:$0xff] %vm710_vm0, %v637_v57 }
 0x270   :  { %v703_v58 = vpop.trf.xlu2 }
 0x271   :  { %891 = vst.msk [vmem:[%s2219_s2 + $0x5a8] sm:$0xff] %vm710_vm0, %v703_v58 }
 0x272   :  { %v670_v59 = vpop.trf.xlu1  ;;  %v638_v40 = vpop.trf.xlu0 }
 0x273   :  { %857 = vst.msk [vmem:[%s2219_s2 + $0x498] sm:$0xff] %vm710_vm0, %v670_v59 }
 0x274   :  { %825 = vst.msk [vmem:[%s2219_s2 + $0x398] sm:$0xff] %vm710_vm0, %v638_v40 }
 0x278   :  { %v704_v41 = vpop.trf.xlu2 }
 0x279   :  { %893 = vst.msk [vmem:[%s2219_s2 + $0x5b8] sm:$0xff] %vm710_vm0, %v704_v41 }
 0x27a   :  { %v671_v44 = vpop.trf.xlu1  ;;  %v639_v60 = vpop.trf.xlu0 }
 0x27b   :  { %859 = vst.msk [vmem:[%s2219_s2 + $0x4a8] sm:$0xff] %vm710_vm0, %v671_v44 }
 0x27c   :  { %827 = vst.msk [vmem:[%s2219_s2 + $0x3a8] sm:$0xff] %vm710_vm0, %v639_v60 }
 0x280   :  { %v705_v61 = vpop.trf.xlu2 }
 0x281   :  { %895 = vst.msk [vmem:[%s2219_s2 + $0x5c8] sm:$0xff] %vm710_vm0, %v705_v61 }
 0x282   :  { %v672_v62 = vpop.trf.xlu1  ;;  %v640_v63 = vpop.trf.xlu0 }
 0x283   :  { %861 = vst.msk [vmem:[%s2219_s2 + $0x4b8] sm:$0xff] %vm710_vm0, %v672_v62 }
 0x284   :  { %829 = vst.msk [vmem:[%s2219_s2 + $0x3b8] sm:$0xff] %vm710_vm0, %v640_v63 }
 0x288   :  { %v706_v0 = vpop.trf.xlu2 }
 0x289   :  { %897 = vst.msk [vmem:[%s2219_s2 + $0x5d8] sm:$0xff] %vm710_vm0, %v706_v0 }
 0x28a   :  { %v673_v2 = vpop.trf.xlu1  ;;  %v641_v5 = vpop.trf.xlu0 }
 0x28b   :  { %863 = vst.msk [vmem:[%s2219_s2 + $0x4c8] sm:$0xff] %vm710_vm0, %v673_v2 }
 0x28c   :  { %831 = vst.msk [vmem:[%s2219_s2 + $0x3c8] sm:$0xff] %vm710_vm0, %v641_v5 }
 0x290   :  { %v707_v7 = vpop.trf.xlu2 }
 0x291   :  { %899 = vst.msk [vmem:[%s2219_s2 + $0x5e8] sm:$0xff] %vm710_vm0, %v707_v7 }
 0x292   :  { %v674_v8 = vpop.trf.xlu1  ;;  %v642_v9 = vpop.trf.xlu0 }
 0x293   :  { %865 = vst.msk [vmem:[%s2219_s2 + $0x4d8] sm:$0xff] %vm710_vm0, %v674_v8 }
 0x294   :  { %833 = vst.msk [vmem:[%s2219_s2 + $0x3d8] sm:$0xff] %vm710_vm0, %v642_v9 }
 0x298   :  { %v708_v10 = vpop.trf.xlu2 }
 0x299   :  { %901 = vst.msk [vmem:[%s2219_s2 + $0x5f8] sm:$0xff] %vm710_vm0, %v708_v10 }
 0x29a   :  { %v675_v11 = vpop.trf.xlu1  ;;  %v643_v12 = vpop.trf.xlu0 }
 0x29b   :  { %867 = vst.msk [vmem:[%s2219_s2 + $0x4e8] sm:$0xff] %vm710_vm0, %v675_v11 }
 0x29c   :  { %835 = vst.msk [vmem:[%s2219_s2 + $0x3e8] sm:$0xff] %vm710_vm0, %v643_v12 }
 0x2a2   :  { %v676_v13 = vpop.trf.xlu1  ;;  %v644_v14 = vpop.trf.xlu0 }
 0x2a3   :  { %869 = vst.msk [vmem:[%s2219_s2 + $0x4f8] sm:$0xff] %vm710_vm0, %v676_v13 }
 0x2a4   :  { %837 = vst.msk [vmem:[%s2219_s2 + $0x3f8] sm:$0xff] %vm710_vm0, %v644_v14 }

</bundles_post_ra>
